<compile_context>
chip_gen: v6e
topology: v6e:2x2x1
jax: 0.10.0
libtpu: 0.0.40
codegen_flags: <defaults>
</compile_context>

<pallas_src>
import jax
import jax.numpy as jnp
from jax.experimental import pallas as pl
from jax.experimental.pallas import tpu as pltpu


def _cdiv(a, b):
    return -(-a // b)


# ---------------------------------------------------------------------------
# Kernel body (shared by both paths): pure VPU elementwise adds on whatever
# blocks the BlockSpecs hand us.
# ---------------------------------------------------------------------------
def _build_layer_kernel(h_ref, l_ref, yh_ref, yl_ref):
    yh_ref[...] = h_ref[...] + jnp.asarray(1, dtype=yh_ref.dtype)
    yl_ref[...] = l_ref[...] + jnp.asarray(2, dtype=yl_ref.dtype)


# Path-selection / tiling constants.
_LANES = 128
_BLOCK_ROWS = 512                        # (512,128) f32 block = 256 KiB
_GRID_THRESHOLD = _BLOCK_ROWS * _LANES   # below this: whole-array, no grid


def _forward_small(h2, l2):
    """Whole-array VMEM blocks, no grid.  For tiny shapes (module's S*B=32)."""
    return pl.pallas_call(
        _build_layer_kernel,
        out_shape=(
            jax.ShapeDtypeStruct(h2.shape, h2.dtype),
            jax.ShapeDtypeStruct(l2.shape, l2.dtype),
        ),
        # Mirror the PyTorch in-place `x_dict['l'] += 2`: reuse l's buffer.
        # Zero-copy only when the caller donates 'l'; otherwise XLA copies,
        # keeping the caller's array intact.
        input_output_aliases={1: 1},
    )(h2, l2)


def _forward_gridded(h_flat, l_flat):
    """Sublane/lane-dense (rows,128) slab + 1-D 'parallel' grid, for large n."""
    n = h_flat.shape[0]
    rows = _cdiv(n, _LANES)
    rows8 = _cdiv(rows, 8) * 8
    block_rows = min(_BLOCK_ROWS, rows8)
    rows_pad = _cdiv(rows8, block_rows) * block_rows
    n_pad = rows_pad * _LANES
    pad = n_pad - n

    hp = jnp.pad(h_flat, (0, pad)).reshape(rows_pad, _LANES)
    lp = jnp.pad(l_flat, (0, pad)).reshape(rows_pad, _LANES)

    spec = pl.BlockSpec((block_rows, _LANES), lambda i: (i, 0))
    yh, yl = pl.pallas_call(
        _build_layer_kernel,
        out_shape=(
            jax.ShapeDtypeStruct(hp.shape, hp.dtype),
            jax.ShapeDtypeStruct(lp.shape, lp.dtype),
        ),
        grid=(rows_pad // block_rows,),
        in_specs=[spec, spec],
        out_specs=(spec, spec),
        compiler_params=pltpu.CompilerParams(
            dimension_semantics=("parallel",),  # v7x: both TCs split the grid
        ),
    )(hp, lp)
    return yh.reshape(-1)[:n], yl.reshape(-1)[:n]


@jax.jit
def _build_layer_forward_impl(h, l):
    S, B = l.shape
    n = S * B
    h2 = h.reshape(S, B)  # squeeze trailing 1 -> lane-dense 2-D view
    if n < _GRID_THRESHOLD:  # static (Python) branch at trace time
        yh2, yl2 = _forward_small(h2, l)
    else:
        yh_f, yl_f = _forward_gridded(h2.reshape(n), l.reshape(n))
        yh2, yl2 = yh_f.reshape(S, B), yl_f.reshape(S, B)
    return yh2.reshape(S, B, 1), yl2


def build_layer_forward(x_dict):
    """Pallas equivalent of Build_Layer.forward.

    Returns (y_dict, updated_x_dict) where y_dict['h'] = h + 1 and
    updated_x_dict['l'] = l + 2 (functional stand-in for the PyTorch in-place
    mutation; the caller's arrays are NOT donated / clobbered).
    """
    y_h, new_l = _build_layer_forward_impl(x_dict['h'], x_dict['l'])
    new_x = dict(x_dict)
    new_x['l'] = new_l
    return {'h': y_h}, new_x


def build_layer_forward_ref(x_dict):
    """Pure-JAX reference (also the recommended production path at this size)."""
    y_dict = {'h': x_dict['h'] + 1}
    new_x = dict(x_dict)
    new_x['l'] = x_dict['l'] + 2
    return y_dict, new_x


if __name__ == "__main__":
    key = jax.random.PRNGKey(0)
    k_h, k_l = jax.random.split(key)

    # Module-implied small shapes: Input S*B*1, Mask S*B (seq=8, batch=4).
    S, B = 8, 4
    h = jax.random.normal(k_h, (S, B, 1), dtype=jnp.float32)
    l = jax.random.normal(k_l, (S, B), dtype=jnp.float32)

    # Reference computed BEFORE running the kernel (review: a true in-place
    # clobber of 'l' would otherwise corrupt the reference itself).
    y_ref, x_ref = build_layer_forward_ref({'h': h, 'l': l})
    jax.block_until_ready((y_ref['h'], x_ref['l']))

    x_dict = {'h': h, 'l': l}
    y_dict, updated_x = build_layer_forward(x_dict)
    jax.block_until_ready((y_dict['h'], updated_x['l']))

    assert y_dict['h'].shape == (S, B, 1)
    assert updated_x['l'].shape == (S, B)
    assert jnp.allclose(y_dict['h'], y_ref['h'])
    assert jnp.allclose(updated_x['l'], x_ref['l'])
    # Caller's 'l' buffer must NOT have been clobbered (no donation).
    assert jnp.allclose(x_dict['l'] + 2, updated_x['l'])

    # Larger shape: exercises the tiled (rows,128) grid path (parallel grid
    # for v7x megacore; block sized for v7x's tighter VMEM budget).
    S2, B2 = 1024, 128
    h_big = jax.random.normal(k_h, (S2, B2, 1), dtype=jnp.float32)
    l_big = jax.random.normal(k_l, (S2, B2), dtype=jnp.float32)
    y_ref2, x_ref2 = build_layer_forward_ref({'h': h_big, 'l': l_big})
    y2, upd2 = build_layer_forward({'h': h_big, 'l': l_big})
    jax.block_until_ready((y2['h'], upd2['l']))
    assert jnp.allclose(y2['h'], y_ref2['h'])
    assert jnp.allclose(upd2['l'], x_ref2['l'])

    print("KERNEL_OK")
</pallas_src>

<mosaic_0001>
module attributes {stable_mosaic.version = 11 : i64} {
  func.func @_build_layer_kernel(%arg0: memref<8x4xf32, #tpu.memory_space<vmem>>, %arg1: memref<8x4xf32, #tpu.memory_space<vmem>>, %arg2: memref<8x4xf32, #tpu.memory_space<vmem>>, %arg3: memref<8x4xf32, #tpu.memory_space<vmem>>) attributes {dimension_semantics = [], scalar_prefetch = 0 : i64, scratch_operands = 0 : i64, tpu.core_type = #tpu.core_type<tc>} {
    %c0 = arith.constant 0 : index
    %c0_0 = arith.constant 0 : index
    %0 = vector.load %arg0[%c0, %c0_0] : memref<8x4xf32, #tpu.memory_space<vmem>>, vector<8x4xf32>
    %cst = arith.constant 1.000000e+00 : f32
    %1 = vector.broadcast %cst : f32 to vector<8x4xf32>
    %2 = arith.addf %0, %1 : vector<8x4xf32>
    %c0_1 = arith.constant 0 : index
    %c0_2 = arith.constant 0 : index
    %3 = vector.load %arg2[%c0_1, %c0_2] : memref<8x4xf32, #tpu.memory_space<vmem>>, vector<8x4xf32>
    tpu.vector_store %arg2[%c0_1, %c0_2], %2 {strides = array<i32>} : memref<8x4xf32, #tpu.memory_space<vmem>>, vector<8x4xf32>,
    %c0_3 = arith.constant 0 : index
    %c0_4 = arith.constant 0 : index
    %4 = vector.load %arg1[%c0_3, %c0_4] : memref<8x4xf32, #tpu.memory_space<vmem>>, vector<8x4xf32>
    %cst_5 = arith.constant 2.000000e+00 : f32
    %5 = vector.broadcast %cst_5 : f32 to vector<8x4xf32>
    %6 = arith.addf %4, %5 : vector<8x4xf32>
    %c0_6 = arith.constant 0 : index
    %c0_7 = arith.constant 0 : index
    %7 = vector.load %arg3[%c0_6, %c0_7] : memref<8x4xf32, #tpu.memory_space<vmem>>, vector<8x4xf32>
    tpu.vector_store %arg3[%c0_6, %c0_7], %6 {strides = array<i32>} : memref<8x4xf32, #tpu.memory_space<vmem>>, vector<8x4xf32>,
    return
  }
}

</mosaic_0001>

<bundles_post_ra>
// kernel: _build_layer_forward_impl.1
= control target key start
LH: loop header
LB: loop body
LE: loop exit
PB: predicated region body
PF: predicated region fallthrough
CT: control target
= control target key end

     0   :  { %vm15_vm0 = vcmask 31744   ;;  %s60_s0 = inlined_call_operand.vmem [shape: f32[8,4], index: 0, kind: input, shape index: {}]   ;;  %s61_s1 = inlined_call_operand.vmem [shape: f32[8,4], index: 1, kind: input, shape index: {}, may-alias: {1,3}]   ;;  %s62_s2 = inlined_call_operand.vmem [shape: f32[8,4], index: 2, kind: output, shape index: {0}]   ;;  %s63_s3 = inlined_call_operand.vmem [shape: f32[8,4], index: 3, kind: output, shape index: {1}, may-alias: {1,3}]  }
   0x1   :  { %v13_v0 = vld [vmem:[%s60_s0] sm:$0xff] }
   0x2   :  { %v17_v1 = vld [vmem:[%s61_s1] sm:$0xff]  ;;  %v14_v2 = vadd.f32 1.0, %v13_v0 }
   0x3   :  { %v18_v3 = vadd.f32 2.0, %v17_v1 }
   0x4   :  { %16 = vst.msk [vmem:[%s62_s2] sm:$0xff] %vm15_vm0, %v14_v2 }
   0x5   :  { %19 = vst.msk [vmem:[%s63_s3] sm:$0xff] %vm15_vm0, %v18_v3 }

</bundles_post_ra>
